<compile_context>
chip_gen: v7x
topology: tpu7x:2x2x1
jax: 0.10.0
libtpu: 0.0.40
codegen_flags: <defaults>
</compile_context>

<pallas_src>
import functools

import jax
import jax.numpy as jnp
from jax import lax
from jax.experimental import pallas as pl
from jax.experimental.pallas import tpu as pltpu


# --------------------------------------------------------------------------
# helpers used inside kernels
# --------------------------------------------------------------------------
def _layernorm(x, gamma, beta, eps=1e-5):
    """One-pass LayerNorm (biased variance, eps=1e-5 -> matches torch)."""
    m = jnp.mean(x, axis=-1, keepdims=True)
    m2 = jnp.mean(x * x, axis=-1, keepdims=True)
    var = m2 - m * m
    mult = lax.rsqrt(var + jnp.float32(eps)) * gamma       # fused rsqrt*gamma
    return (x - m) * mult + beta


def _bf16_dot(a, b):
    """MXU matmul with bf16 operands and f32 accumulation."""
    return jnp.dot(a.astype(jnp.bfloat16), b.astype(jnp.bfloat16),
                   preferred_element_type=jnp.float32)


# --------------------------------------------------------------------------
# kernel A: K / V projection of the context (to_kv, bias=False)
# --------------------------------------------------------------------------
def _kv_proj_kernel(ctx_ref, wk_ref, wv_ref, k_ref, v_ref):
    c = ctx_ref[...].astype(jnp.bfloat16)
    k_ref[...] = jnp.dot(c, wk_ref[...].astype(jnp.bfloat16),
                         preferred_element_type=jnp.float32)
    v_ref[...] = jnp.dot(c, wv_ref[...].astype(jnp.bfloat16),
                         preferred_element_type=jnp.float32)


# --------------------------------------------------------------------------
# kernel B: fused LN1 -> Q proj -> cross-attention -> out proj -> +residual
#           -> LN2 -> MLP -> +residual, tiled over query rows.
# --------------------------------------------------------------------------
def _fusion_kernel(q_ref, k_ref, v_ref, wq_ref, wo_ref, w1_ref, w2_ref,
                   pd_ref, b1_ref, o_ref, *, heads, dim_head, scale):
    f32, bf16 = jnp.float32, jnp.bfloat16

    x = q_ref[...]                                  # (TN, D) f32 (also the residual)
    p = pd_ref[...]                                 # (6, D) packed row params
    g1, be1 = p[0:1, :], p[1:2, :]                  # norm1 weight / bias
    g2, be2 = p[2:3, :], p[3:4, :]                  # norm2 weight / bias
    bo, b2 = p[4:5, :], p[5:6, :]                   # to_out bias, MLP fc2 bias

    # ---- LayerNorm 1 ------------------------------------------------------
    x1 = _layernorm(x, g1, be1)

    # ---- Q projection (to_q, bias=False) ----------------------------------
    q = _bf16_dot(x1, wq_ref[...])                  # (TN, H*Dh)

    k = k_ref[...]                                  # (M, H*Dh) f32
    v = v_ref[...]                                  # (M, H*Dh) f32
    wo = wo_ref[...]                                # (H*Dh, D) f32

    # ---- cross-attention: each (row, head) attends over all (ctx row, head)
    # pairs.  Heads = static lane-block slices; softmax is computed over the
    # union of the per-head logit blocks; the to_out projection is accumulated
    # head-block by head-block (mathematically identical to concat + matmul).
    attn_out = jnp.zeros(x.shape, f32)              # (TN, D)
    for h in range(heads):
        q_h = (q[:, h * dim_head:(h + 1) * dim_head] * scale).astype(bf16)
        sims = []
        for hp in range(heads):
            k_hp = k[:, hp * dim_head:(hp + 1) * dim_head].astype(bf16)
            sims.append(lax.dot_general(                     # q_h @ k_hp.T
                q_h, k_hp, (((1,), (1,)), ((), ())),
                preferred_element_type=f32))                 # (TN, M)
        row_max = functools.reduce(
            jnp.maximum, [jnp.max(s, axis=-1, keepdims=True) for s in sims])
        probs = [jnp.exp(s - row_max) for s in sims]
        denom = functools.reduce(
            jnp.add, [jnp.sum(pb, axis=-1, keepdims=True) for pb in probs])
        inv = pl.reciprocal(denom, approx=True)              # EUP slot, ~free

        o_h = jnp.zeros((x.shape[0], dim_head), f32)
        for hp in range(heads):
            a_blk = (probs[hp] * inv).astype(bf16)           # (TN, M)
            v_hp = v[:, hp * dim_head:(hp + 1) * dim_head].astype(bf16)
            o_h = o_h + jnp.dot(a_blk, v_hp, preferred_element_type=f32)

        wo_h = wo[h * dim_head:(h + 1) * dim_head, :].astype(bf16)
        attn_out = attn_out + jnp.dot(o_h.astype(bf16), wo_h,
                                      preferred_element_type=f32)

    h1 = attn_out + bo + x                                   # to_out bias + residual

    # ---- LayerNorm 2 + MLP (Linear -> GELU(erf) -> Linear) + residual -----
    x2 = _layernorm(h1, g2, be2)
    hmid = _bf16_dot(x2, w1_ref[...]) + b1_ref[...]          # (TN, F)
    gmid = 0.5 * hmid * (1.0 + lax.erf(hmid * jnp.float32(0.7071067811865476)))
    out = _bf16_dot(gmid, w2_ref[...]) + b2 + h1
    o_ref[...] = out.astype(o_ref.dtype)


# --------------------------------------------------------------------------
# wrapper
# --------------------------------------------------------------------------
def _pad_rows(x, mult):
    pad = (-x.shape[0]) % mult
    if pad:
        x = jnp.pad(x, ((0, pad), (0, 0)))
    return x


def fusion_block_forward(query, context, params, *, heads, dim_head,
                         tile_n=128, tile_m=128):
    """query: (N, D), context: (M, Cd) -> (N, D).  params is the tuple
    (wq, wk, wv, wo, bo, g1, be1, g2, be2, w1, b1m, w2, b2m) with weights
    already stored as (in_features, out_features) matrices."""
    (wq, wk, wv, wo, bo, g1, be1, g2, be2, w1, b1m, w2, b2m) = params
    N, D = query.shape
    M, Cd = context.shape
    inner = heads * dim_head
    F = w1.shape[1]
    scale = float(dim_head) ** -0.5

    # ---- kernel A: K/V projection over context rows ------------------------
    tile_m = min(tile_m, M)
    ctx_p = _pad_rows(context, tile_m)
    Mp = ctx_p.shape[0]
    k, v = pl.pallas_call(
        _kv_proj_kernel,
        out_shape=(jax.ShapeDtypeStruct((Mp, inner), jnp.float32),
                   jax.ShapeDtypeStruct((Mp, inner), jnp.float32)),
        grid_spec=pltpu.PrefetchScalarGridSpec(
            num_scalar_prefetch=0,
            grid=(Mp // tile_m,),
            in_specs=[pl.BlockSpec((tile_m, Cd), lambda i: (i, 0)),
                      pl.BlockSpec((Cd, inner), lambda i: (0, 0)),
                      pl.BlockSpec((Cd, inner), lambda i: (0, 0))],
            out_specs=(pl.BlockSpec((tile_m, inner), lambda i: (i, 0)),
                       pl.BlockSpec((tile_m, inner), lambda i: (i, 0)))),
        compiler_params=pltpu.CompilerParams(
            dimension_semantics=("parallel",)),
    )(ctx_p, wk, wv)
    k, v = k[:M], v[:M]          # drop any padded context rows (no fake keys)

    # ---- kernel B: fused attention + MLP block, tiled over query rows ------
    tile_n = min(tile_n, N)
    q_p = _pad_rows(query, tile_n)                  # pad rows (independent) ...
    Np = q_p.shape[0]

    params_d = jnp.stack([g1, be1, g2, be2, bo, b2m], axis=0)   # (6, D)
    b1_2d = b1m.reshape(1, F)

    kernel = functools.partial(_fusion_kernel, heads=heads,
                               dim_head=dim_head, scale=scale)
    out = pl.pallas_call(
        kernel,
        out_shape=jax.ShapeDtypeStruct((Np, D), jnp.float32),
        grid_spec=pltpu.PrefetchScalarGridSpec(
            num_scalar_prefetch=0,
            grid=(Np // tile_n,),
            in_specs=[
                pl.BlockSpec((tile_n, D), lambda i: (i, 0)),   # query tile
                pl.BlockSpec((M, inner), lambda i: (0, 0)),    # K (resident)
                pl.BlockSpec((M, inner), lambda i: (0, 0)),    # V (resident)
                pl.BlockSpec((D, inner), lambda i: (0, 0)),    # Wq
                pl.BlockSpec((inner, D), lambda i: (0, 0)),    # Wo
                pl.BlockSpec((D, F), lambda i: (0, 0)),        # MLP W1
                pl.BlockSpec((F, D), lambda i: (0, 0)),        # MLP W2
                pl.BlockSpec((6, D), lambda i: (0, 0)),        # packed (·,D) params
                pl.BlockSpec((1, F), lambda i: (0, 0)),        # MLP fc1 bias
            ],
            out_specs=pl.BlockSpec((tile_n, D), lambda i: (i, 0))),
        compiler_params=pltpu.CompilerParams(
            dimension_semantics=("parallel",)),
    )(q_p, k, v, wq, wo, w1, w2, params_d, b1_2d)
    return out[:N]                                   # ... and slice them back off


# --------------------------------------------------------------------------
# pure-JAX reference (f32 or bf16 matmul operands) for validation
# --------------------------------------------------------------------------
def _reference_forward(query, context, params, *, heads, dim_head,
                       matmul_dtype=jnp.float32):
    (wq, wk, wv, wo, bo, g1, be1, g2, be2, w1, b1m, w2, b2m) = params

    def mm(a, b):
        return jnp.dot(a.astype(matmul_dtype), b.astype(matmul_dtype),
                       preferred_element_type=jnp.float32)

    def ln(x, g, b):
        mu = jnp.mean(x, -1, keepdims=True)
        var = jnp.mean((x - mu) ** 2, -1, keepdims=True)
        return (x - mu) / jnp.sqrt(var + 1e-5) * g + b

    N, _ = query.shape
    M = context.shape[0]
    inner = heads * dim_head

    x1 = ln(query, g1, be1)
    q = mm(x1, wq)
    kk = mm(context, wk)
    vv = mm(context, wv)
    qr = q.reshape(N * heads, dim_head)
    kr = kk.reshape(M * heads, dim_head)
    vr = vv.reshape(M * heads, dim_head)
    sim = mm(qr, kr.T) * (float(dim_head) ** -0.5)
    attn = jax.nn.softmax(sim, axis=-1)
    o = mm(attn, vr).reshape(N, inner)
    h1 = mm(o, wo) + bo + query
    x2 = ln(h1, g2, be2)
    hmid = mm(x2, w1) + b1m
    gmid = 0.5 * hmid * (1.0 + lax.erf(hmid * 0.7071067811865476))
    return mm(gmid, w2) + b2m + h1


# --------------------------------------------------------------------------
if __name__ == "__main__":
    # Small, lane-friendly shapes consistent with the module:
    #   in_dim=256, context_dim=128, mlp_dim=512, heads=2, dim_head=128
    #   N=256 query rows, M=256 context rows  -> 2 parallel grid steps per call.
    N, M = 256, 256
    D, Cd = 256, 128
    heads, dim_head = 2, 128
    inner = heads * dim_head
    F = 512

    key = jax.random.PRNGKey(0)
    ks = jax.random.split(key, 12)
    query = jax.random.normal(ks[0], (N, D), jnp.float32)
    context = jax.random.normal(ks[1], (M, Cd), jnp.float32)

    def lin(k_, fan_in, shape):
        return jax.random.normal(k_, shape, jnp.float32) / jnp.sqrt(fan_in)

    wq = lin(ks[2], D, (D, inner))        # to_q  (bias=False)
    wk = lin(ks[3], Cd, (Cd, inner))      # to_kv K half (bias=False)
    wv = lin(ks[4], Cd, (Cd, inner))      # to_kv V half (bias=False)
    wo = lin(ks[5], inner, (inner, D))    # to_out Linear
    bo = jax.random.normal(ks[6], (D,), jnp.float32) * 0.01
    g1 = jnp.ones((D,), jnp.float32)
    be1 = jnp.zeros((D,), jnp.float32)
    g2 = jnp.ones((D,), jnp.float32)
    be2 = jnp.zeros((D,), jnp.float32)
    w1 = lin(ks[7], D, (D, F))            # MLP fc1
    b1m = jax.random.normal(ks[8], (F,), jnp.float32) * 0.01
    w2 = lin(ks[9], F, (F, D))            # MLP fc2
    b2m = jax.random.normal(ks[10], (D,), jnp.float32) * 0.01

    params = (wq, wk, wv, wo, bo, g1, be1, g2, be2, w1, b1m, w2, b2m)

    out = fusion_block_forward(query, context, params,
                               heads=heads, dim_head=dim_head)
    out = jax.block_until_ready(out)
    assert out.shape == (N, D)

    # Tight check vs a bf16-matmul reference (same MXU operand precision) and
    # a looser check vs the pure-f32 reference (bf16 operand quantization noise).
    ref_bf = _reference_forward(query, context, params, heads=heads,
                                dim_head=dim_head, matmul_dtype=jnp.bfloat16)
    ref_f32 = _reference_forward(query, context, params, heads=heads,
                                 dim_head=dim_head, matmul_dtype=jnp.float32)
    err_bf = float(jnp.max(jnp.abs(out - ref_bf)))
    err_f32 = float(jnp.max(jnp.abs(out - ref_f32)))
    assert err_bf < 5e-2, f"mismatch vs bf16 reference: {err_bf}"
    assert err_f32 < 2.5e-1, f"mismatch vs f32 reference: {err_f32}"

    print("KERNEL_OK")
</pallas_src>

<mosaic_0001>
module attributes {stable_mosaic.version = 11 : i64} {
  func.func @_kv_proj_kernel(%arg0: i32, %arg1: memref<128x128xf32, #tpu.memory_space<vmem>>, %arg2: memref<128x256xf32, #tpu.memory_space<vmem>>, %arg3: memref<128x256xf32, #tpu.memory_space<vmem>>, %arg4: memref<128x256xf32, #tpu.memory_space<vmem>>, %arg5: memref<128x256xf32, #tpu.memory_space<vmem>>) attributes {dimension_semantics = [#tpu.dimension_semantics<parallel>], iteration_bounds = array<i64: 2>, scalar_prefetch = 0 : i64, scratch_operands = 0 : i64, tpu.core_type = #tpu.core_type<tc>, window_params = [{transform_indices = @transform_0, window_bounds = array<i64: 128, 128>}, {pipeline_mode = #tpu.pipeline_mode<synchronous>, transform_indices = @transform_1, window_bounds = array<i64: 128, 256>}, {pipeline_mode = #tpu.pipeline_mode<synchronous>, transform_indices = @transform_2, window_bounds = array<i64: 128, 256>}, {transform_indices = @transform_3, window_bounds = array<i64: 128, 256>}, {transform_indices = @transform_4, window_bounds = array<i64: 128, 256>}]} {
    %c0 = arith.constant 0 : index
    %c0_0 = arith.constant 0 : index
    %0 = vector.load %arg1[%c0, %c0_0] : memref<128x128xf32, #tpu.memory_space<vmem>>, vector<128x128xf32>
    %1 = arith.truncf %0 : vector<128x128xf32> to vector<128x128xbf16>
    %c0_1 = arith.constant 0 : index
    %c0_2 = arith.constant 0 : index
    %2 = vector.load %arg2[%c0_1, %c0_2] : memref<128x256xf32, #tpu.memory_space<vmem>>, vector<128x256xf32>
    %3 = arith.truncf %2 : vector<128x256xf32> to vector<128x256xbf16>
    %cst = arith.constant dense<0.000000e+00> : vector<128x256xf32>
    %4 = tpu.matmul %1, %3, %cst {dimension_numbers = #tpu.dot_dimension_numbers<[1], [0], [0], [1], [0, 0, 1, 1], [], []>} : vector<128x128xbf16>, vector<128x256xbf16>, vector<128x256xf32> -> vector<128x256xf32>
    %c0_3 = arith.constant 0 : index
    %c0_4 = arith.constant 0 : index
    %5 = vector.load %arg4[%c0_3, %c0_4] : memref<128x256xf32, #tpu.memory_space<vmem>>, vector<128x256xf32>
    tpu.vector_store %arg4[%c0_3, %c0_4], %4 {strides = array<i32>} : memref<128x256xf32, #tpu.memory_space<vmem>>, vector<128x256xf32>,
    %c0_5 = arith.constant 0 : index
    %c0_6 = arith.constant 0 : index
    %6 = vector.load %arg3[%c0_5, %c0_6] : memref<128x256xf32, #tpu.memory_space<vmem>>, vector<128x256xf32>
    %7 = arith.truncf %6 : vector<128x256xf32> to vector<128x256xbf16>
    %cst_7 = arith.constant dense<0.000000e+00> : vector<128x256xf32>
    %8 = tpu.matmul %1, %7, %cst_7 {dimension_numbers = #tpu.dot_dimension_numbers<[1], [0], [0], [1], [0, 0, 1, 1], [], []>} : vector<128x128xbf16>, vector<128x256xbf16>, vector<128x256xf32> -> vector<128x256xf32>
    %c0_8 = arith.constant 0 : index
    %c0_9 = arith.constant 0 : index
    %9 = vector.load %arg5[%c0_8, %c0_9] : memref<128x256xf32, #tpu.memory_space<vmem>>, vector<128x256xf32>
    tpu.vector_store %arg5[%c0_8, %c0_9], %8 {strides = array<i32>} : memref<128x256xf32, #tpu.memory_space<vmem>>, vector<128x256xf32>,
    return
  }
  func.func @transform_0(%arg0: i32) -> (i32, i32) {
    %c0_i32 = arith.constant 0 : i32
    %c0_i32_0 = arith.constant 0 : i32
    return %arg0, %c0_i32 : i32, i32
  }
  func.func @transform_1(%arg0: i32) -> (i32, i32) {
    %c0_i32 = arith.constant 0 : i32
    %c0_i32_0 = arith.constant 0 : i32
    %c0_i32_1 = arith.constant 0 : i32
    return %c0_i32, %c0_i32_0 : i32, i32
  }
  func.func @transform_2(%arg0: i32) -> (i32, i32) {
    %c0_i32 = arith.constant 0 : i32
    %c0_i32_0 = arith.constant 0 : i32
    %c0_i32_1 = arith.constant 0 : i32
    return %c0_i32, %c0_i32_0 : i32, i32
  }
  func.func @transform_3(%arg0: i32) -> (i32, i32) {
    %c0_i32 = arith.constant 0 : i32
    %c0_i32_0 = arith.constant 0 : i32
    return %arg0, %c0_i32 : i32, i32
  }
  func.func @transform_4(%arg0: i32) -> (i32, i32) {
    %c0_i32 = arith.constant 0 : i32
    %c0_i32_0 = arith.constant 0 : i32
    return %arg0, %c0_i32 : i32, i32
  }
}

</mosaic_0001>

<bundles_post_ra>
// kernel: tpu_custom_call.1
= control target key start
LH: loop header
LB: loop body
LE: loop exit
PB: predicated region body
PF: predicated region fallthrough
CT: control target
= control target key end

     0   :  { %10 = vsyncpa [#allocation3], 0  ;;  %s1542_s0 = inlined_call_operand.hbm [shape: f32[256,128], index: 0, kind: input, shape index: {}]   ;;  %s1543_s1 = inlined_call_operand.hbm [shape: f32[128,256], index: 1, kind: input, shape index: {}]   ;;  %s1544_s2 = inlined_call_operand.hbm [shape: f32[128,256], index: 2, kind: input, shape index: {}]   ;;  %s1545_s3 = inlined_call_operand.hbm [shape: f32[256,256], index: 3, kind: output, shape index: {0}]   ;;  %s1546_s4 = inlined_call_operand.hbm [shape: f32[256,256], index: 4, kind: output, shape index: {1}]  }
   0x1   :  { %12 = vsyncpa [#allocation3 + $0x1], 0 }
   0x2   :  { %13 = vsyncpa [#allocation6], 0 }
   0x3   :  { %14 = vsyncpa [#allocation4], 0 }
   0x4   :  { %16 = vsyncpa [#allocation4 + $0x1], 0 }
   0x5   :  { %17 = vsyncpa [#allocation10], 0 }
   0x6   :  { %19 = vsyncpa [#allocation10 + $0x1], 0  ;;  %s1166_s15 = smov 0   ;;  %s1168_s16 = smov 0  }
   0x7   :  { %s1170_s17 = smov 0   ;;  %s1172_s18 = smov 0  }
   0x8 LB: > { %s1187_s19 = sadd.s32 4294967295, %s1127_s18   ;;  %s831_s20 = sadd.s32 4294967294, %s1127_s18   ;;  %s1127_s18 = sphi %s1172_s18, %s1566_s18   ;;  %s1123_s17 = sphi %s1170_s17, %s1565_s17   ;;  %s1119_s16 = sphi %s1168_s16, %s1564_s16   ;;  %s1115_s15 = sphi %s1166_s15, %s1563_s15  }
   0x9   : > { %p45_p0 = scmp.ne.s32.totalorder %s1119_s16, %s1115_s15  ;;  %p1547_p1 = scmp.eq.s32.totalorder %s1187_s19, 0 }
   0xa   : > { %p117_p3 = scmp.eq.s32.totalorder %s831_s20, 1  ;;  %p832_p5 = scmp.ge.s32.totalorder %s1127_s18, 1 }
   0xb   : > { %p1196_p4 = por %p1547_p1, %p45_p0  ;;  %p150_p7 = scmp.lt.s32.totalorder %s1127_s18, 3 }
   0xc   : > { %p1201_p6 = por %p117_p3, %p45_p0  ;;  %s1129_s24 = smov [#allocation5]  }
   0xd   : > { %s1550_s21 = scalar_select %p1196_p4, 1, 0 }
   0xe   : > { %s1551_s22 = scalar_select %p1201_p6, 1, 0 }
   0xf   : > { %p1206_p8 = pnand %p832_p5, %p150_p7  ;;  %s162_s25 = sshll.u32 %s1129_s24, 4  ;;  %s1210_s25 = int_to_ptr.vmem [resolvable:$true] %s162_s25 }
  0x10   : > { %s1130_s27 = smov [#allocation7]   ;;  %s939_s5 = scalar_lea.hbm %s1543_s1, 4096 }
  0x11   : > { %p874_p9 = pneg %p1206_p8  ;;  %s175_s28 = sshll.u32 %s1130_s27, 4  ;;  %s1221_s28 = int_to_ptr.vmem [resolvable:$true] %s175_s28 }
  0x12   : > { %p940_p12 = scmp.ne.s32.totalorder %s1543_s1, %s939_s5  ;;  %p946_p5 = scmp.lt.u32.totalorder %s939_s5, %s1543_s1 }
  0x13   : > { %p1217_p11 = pnand %p874_p9, %p1547_p1 }
  0x15   : > { %p941_p13 = pneg %p1217_p11 }
  0x17   : > { %p942_p0 = pnand %p941_p13, %p940_p12 }
  0x19   : > { %p943_p3 = pneg %p942_p0 }
  0x1b   : > { %p948_p7 = pnand %p946_p5, %p943_p3 }
  0x1d   : > { %951 = shalt.err (!%p948_p7)
}
  0x1e   : > { %s952_s10 = scalar_lea.vmem %s1210_s25, 4096  ;;  %p960_p2 = scmp.lt.s32.totalorder %s1210_s25, %s1210_s25 }
  0x1f   : > { %p953_p9 = scmp.ne.s32.totalorder %s1210_s25, %s952_s10  ;;  %p961_p12 = scmp.lt.s32.totalorder %s952_s10, %s952_s10 }
  0x21   : > { %p955_p10 = pnand %p953_p9, %p941_p13  ;;  %p962_p0 = por %p961_p12, %p960_p2 }
  0x23   : > { %p956_p1 = pneg %p955_p10 }
  0x25   : > { %p963_p6 = pnand %p962_p0, %p956_p1 }
  0x27   : > { %966 = shalt.err (!%p963_p6)
}
  0x28   : > { %s1131_s11 = smov 256   ;;  %s1132_s12 = smov 16  }
  0x29   : > { %877 = dma.hbm_to_vmem [thread:$0]  (!%p1217_p11), %s1543_s1, 4096, %s1210_s25, [#allocation6], %s1131_s11, %s1131_s11, %s1132_s12  }
  0x2a   : > { %s967_s27 = scalar_lea.hbm %s1544_s2, 4096 }
  0x2b   : > { %p968_p2 = scmp.ne.s32.totalorder %s1544_s2, %s967_s27  ;;  %p974_p10 = scmp.lt.u32.totalorder %s967_s27, %s1544_s2 }
  0x2d   : > { %p970_p1 = pnand %p968_p2, %p941_p13 }
  0x2f   : > { %p971_p6 = pneg %p970_p1 }
  0x31   : > { %p976_p3 = pnand %p974_p10, %p971_p6 }
  0x33   : > { %979 = shalt.err (!%p976_p3)
}
  0x34   : > { %s980_s25 = scalar_lea.vmem %s1221_s28, 4096  ;;  %p988_p12 = scmp.lt.s32.totalorder %s1221_s28, %s1221_s28 }
  0x35   : > { %p981_p5 = scmp.ne.s32.totalorder %s1221_s28, %s980_s25  ;;  %p989_p0 = scmp.lt.s32.totalorder %s980_s25, %s980_s25 }
  0x37   : > { %p983_p7 = pnand %p981_p5, %p941_p13  ;;  %p990_p2 = por %p989_p0, %p988_p12 }
  0x39   : > { %p984_p9 = pneg %p983_p7 }
  0x3b   : > { %p991_p1 = pnand %p990_p2, %p984_p9 }
  0x3d   : > { %994 = shalt.err (!%p991_p1)
}
  0x3e   : > { %880 = dma.hbm_to_vmem [thread:$0]  (!%p1217_p11), %s1544_s2, 4096, %s1221_s28, [#allocation6], %s1131_s11, %s1131_s11, %s1132_s12  }
  0x3f   : > { %s1276_s9 = sadd.s32 1, %s1127_s18   ;;  %s32_s26 = sadd.s32 1, %s1123_s17 }
  0x40   : > { %s29_s10 = ssub.s32 %s1127_s18, %s1276_s9  ;;  %p39_p13 = scmp.ne.s32.totalorder %s1123_s17, %s1119_s16 }
  0x41   : > { %p30_p6 = scmp.eq.s32.totalorder %s29_s10, 0  ;;  %p40_p10 = scmp.eq.s32.totalorder %s1127_s18, 0 }
  0x42   : > { %p1554_p3 = scmp.eq.s32.totalorder %s1187_s19, 1  ;;  %p894_p7 = scmp.lt.s32.totalorder %s1127_s18, 2 }
  0x43   : > { %s1292_s14 = scalar_select %p30_p6, %s1123_s17, %s32_s26  }
  0x44   : > { %p1286_p5 = por %p1554_p3, %p39_p13  ;;  %p41_p9 = por %p40_p10, %p39_p13 }
  0x45   : > { %s189_s20 = sand.u32 1, %s1123_s17   ;;  %s855_s28 = sshll.u32 %s1127_s18, 11 }
  0x46   : > { %s1555_s13 = scalar_select %p1286_p5, 1, 0 }
  0x47   : > { %s836_s24 = sshll.u32 %s189_s20, 7  ;;  %s1299_s27 = scalar_lea.hbm %s1542_s0, %s855_s28 }
  0x48   : > { %s193_s29 = scalar_lea.vmem [#allocation2], %s836_s24  ;;  %p1303_p11 = pnand %p894_p7, %p41_p9 }
  0x49   : > { %s200_s30 = sshll.u32 %s193_s29, 4  ;;  %s1307_s6 = scalar_lea.sflag [#allocation3], %s189_s20  ;;  %s1301_s30 = int_to_ptr.vmem [resolvable:$true] %s200_s30 }
  0x4a   : > { %s995_s25 = scalar_lea.hbm %s1299_s27, 2048  ;;  %p997_p0 = pneg %p1303_p11 }
  0x4b   : > { %p996_p12 = scmp.ne.s32.totalorder %s1299_s27, %s995_s25  ;;  %s1000_s26 = scalar_lea.hbm %s1542_s0, 4096 }
  0x4c   : > { %p1001_p13 = scmp.lt.u32.totalorder %s1299_s27, %s1542_s0  ;;  %p1002_p6 = scmp.lt.u32.totalorder %s1000_s26, %s995_s25 }
  0x4d   : > { %p998_p2 = pnand %p997_p0, %p996_p12  ;;  %p1004_p3 = scmp.lt.u32.totalorder %s995_s25, %s1299_s27 }
  0x4e   : > { %p1003_p10 = por %p1002_p6, %p1001_p13 }
  0x4f   : > { %p999_p1 = pneg %p998_p2 }
  0x50   : > { %p1005_p7 = por %p1004_p3, %p1003_p10 }
  0x52   : > { %p1006_p9 = pnand %p1005_p7, %p999_p1 }
  0x54   : > { %1009 = shalt.err (!%p1006_p9)
}
  0x55   : > { %s1010_s20 = scalar_lea.vmem %s1301_s30, 2048  ;;  %s1133_s28 = smov [#allocation2]  }
  0x56   : > { %p1011_p12 = scmp.ne.s32.totalorder %s1301_s30, %s1010_s20  ;;  %s1015_s11 = sshll.u32 %s1133_s28, 4  ;;  %s1016_s11 = int_to_ptr.vmem [resolvable:$false] %s1015_s11 }
  0x57   : > { %s1017_s12 = scalar_lea.vmem %s1016_s11, 4096  ;;  %p1018_p4 = scmp.lt.s32.totalorder %s1301_s30, %s1016_s11 }
  0x58   : > { %p1013_p2 = pnand %p1011_p12, %p997_p0  ;;  %p1019_p13 = scmp.lt.s32.totalorder %s1017_s12, %s1010_s20 }
  0x5a   : > { %p1014_p5 = pneg %p1013_p2  ;;  %p1020_p6 = por %p1019_p13, %p1018_p4 }
  0x5c   : > { %p1021_p10 = pnand %p1020_p6, %p1014_p5 }
  0x5e   : > { %1024 = shalt.err (!%p1021_p10)
}
  0x5f   : > { %s1134_s29 = smov 128   ;;  %s1135_s25 = smov 8  }
  0x60   : > { %884 = dma.hbm_to_vmem [thread:$0]  (!%p1303_p11), %s1299_s27, 2048, %s1301_s30, %s1307_s6, %s1134_s29, %s1134_s29, %s1135_s25  }
  0x61   : > { %212 = sbr.rel (%p1206_p8) target bundleno = 454 (0x1c6), region = 32  ;;  %s1338_s7 = sand.u32 (!%p1206_p8), 1, %s1119_s16  }
  0x62   : > { %s840_s8 = sshll.u32 (!%p1206_p8), %s1338_s7, 7  ;;  %s215_s26 = scalar_lea.sflag (!%p1206_p8), [#allocation3], %s1338_s7 }
  0x63   : > { %s1342_s10 = scalar_lea.vmem (!%p1206_p8), [#allocation2], %s840_s8  ;;  %p1557_p4 = scmp.ne.s32.totalorder (!%p1206_p8), %s1550_s21, 0 }
  0x68   : > { %1098 = dma.done.wait (%p1557_p4), %s215_s26, 2048  }
  0x69   : > { %1100 = vsyncadd (%p1557_p4), %s215_s26, 4294965248  ;;  %p1558_p5 = scmp.eq.s32.totalorder %s1187_s19, 0 }
  0x6b   : > { %1102 = dma.done.wait (%p1558_p5), [#allocation6], 8192   ;;  %p1559_p8 = pmov %p1558_p5 }
  0x6c   : > { %v1136_v0 = vmov 0   ;;  %v285_v1 = vld [vmem:[#allocation5 + $0x8] sm:$0xff]  ;;  %v287_v2 = vld [vmem:[#allocation5 + $0x18] sm:$0xff]  ;;  %v284_v6 = vld [vmem:[#allocation5] sm:$0xff]  ;;  %s843_s21 = sshll.u32 %s1338_s7, 8  ;;  %s857_s30 = sshll.u32 %s1187_s19, 12 }
  0x6d   : > { %1104 = vsyncadd (%p1559_p8), [#allocation6], 4294959104  ;;  %364 = vmatprep.mubr.bf16.mxu0 %v1136_v0  ;;  %557 = vmatprep.mubr.bf16.mxu1 %v1136_v0  ;;  %v478_v3 = vld [vmem:[#allocation7 + $0x8] sm:$0xff]  ;;  %v317_v4 = vpack.c.bf16 %v287_v2, %v285_v1  ;;  %v480_v5 = vld [vmem:[#allocation7 + $0x18] sm:$0xff]  ;;  %s1385_s23 = scalar_lea.vmem [#allocation8], %s843_s21  ;;  %s1388_s27 = scalar_lea.vmem [#allocation9], %s843_s21 }
  0x6e   : > { %v286_v7 = vld [vmem:[#allocation5 + $0x10] sm:$0xff]  ;;  %v510_v8 = vpack.c.bf16 %v480_v5, %v478_v3  ;;  %v477_v10 = vld [vmem:[#allocation7] sm:$0xff]  ;;  %v289_v12 = vld [vmem:[#allocation5 + $0x28] sm:$0xff]  ;;  %s690_s5 = sshll.u32 %s1385_s23, 4  ;;  %s1450_s20 = scalar_lea.hbm %s1545_s3, %s857_s30  ;;  %s1454_s5 = int_to_ptr.vmem [resolvable:$true] %s690_s5 }
  0x6f   : > { %v316_v9 = vpack.c.bf16 %v286_v7, %v284_v6  ;;  %v479_v11 = vld [vmem:[#allocation7 + $0x10] sm:$0xff]  ;;  %332 = vmatprep.subr.bf16.mxu0 %v317_v4  ;;  %v291_v14 = vld [vmem:[#allocation5 + $0x38] sm:$0xff]  ;;  %v482_v15 = vld [vmem:[#allocation7 + $0x28] sm:$0xff]  ;;  %s707_s28 = sshll.u32 %s1388_s27, 4  ;;  %s1463_s12 = scalar_lea.hbm %s1546_s4, %s857_s30  ;;  %s1465_s28 = int_to_ptr.vmem [resolvable:$true] %s707_s28 }
  0x70   : > { %v509_v13 = vpack.c.bf16 %v479_v11, %v477_v10  ;;  %v484_v16 = vld [vmem:[#allocation7 + $0x38] sm:$0xff]  ;;  %525 = vmatprep.subr.bf16.mxu1 %v510_v8  ;;  %v319_v17 = vpack.c.bf16 %v291_v14, %v289_v12  ;;  %v288_v19 = vld [vmem:[#allocation5 + $0x20] sm:$0xff]  ;;  %v290_v20 = vld [vmem:[#allocation5 + $0x30] sm:$0xff]  ;;  %s671_s29 = scalar_lea.sflag [#allocation4], %s1338_s7  ;;  %s1025_s25 = scalar_lea.vmem %s1454_s5, 4096 }
  0x71   : > { %333 = vmatpush1.bf16.msra.mxu0 %v316_v9  ;;  %v512_v18 = vpack.c.bf16 %v484_v16, %v482_v15  ;;  %v481_v21 = vld [vmem:[#allocation7 + $0x20] sm:$0xff]  ;;  %v318_v22 = vpack.c.bf16 %v290_v20, %v288_v19  ;;  %v483_v23 = vld [vmem:[#allocation7 + $0x30] sm:$0xff]  ;;  %v293_v24 = vld [vmem:[#allocation5 + $0x48] sm:$0xff]  ;;  %p1026_p11 = scmp.ne.s32.totalorder %s1454_s5, %s1025_s25  ;;  %p1560_p0 = scmp.ne.s32.totalorder %s1555_s13, 0 }
  0x72   : > { %526 = vmatpush1.bf16.msra.mxu1 %v509_v13  ;;  %v295_v25 = vld [vmem:[#allocation5 + $0x58] sm:$0xff]  ;;  %334 = vmatprep.subr.bf16.mxu0 %v319_v17  ;;  %v511_v26 = vpack.c.bf16 %v483_v23, %v481_v21  ;;  %v486_v28 = vld [vmem:[#allocation7 + $0x48] sm:$0xff]  ;;  %v292_v30 = vld [vmem:[#allocation5 + $0x40] sm:$0xff]  ;;  %s1137_s8 = smov [#allocation8]  }
  0x73   : > { %527 = vmatprep.subr.bf16.mxu1 %v512_v18  ;;  %v321_v27 = vpack.c.bf16 %v295_v25, %v293_v24  ;;  %v488_v29 = vld [vmem:[#allocation7 + $0x58] sm:$0xff]  ;;  %v294_v32 = vld [vmem:[#allocation5 + $0x50] sm:$0xff]  ;;  %v485_v33 = vld [vmem:[#allocation7 + $0x40] sm:$0xff]  ;;  %p1027_p1 = pnand %p1026_p11, %p1560_p0  ;;  %s1029_s26 = sshll.u32 %s1137_s8, 4  ;;  %s1030_s26 = int_to_ptr.vmem [resolvable:$false] %s1029_s26 }
  0x74   : > { %v514_v31 = vpack.c.bf16 %v488_v29, %v486_v28  ;;  %v487_v34 = vld [vmem:[#allocation7 + $0x50] sm:$0xff]  ;;  %v320_v35 = vpack.c.bf16 %v294_v32, %v292_v30  ;;  %v297_v36 = vld [vmem:[#allocation5 + $0x68] sm:$0xff]  ;;  %v299_v37 = vld [vmem:[#allocation5 + $0x78] sm:$0xff]  ;;  %p1032_p7 = scmp.lt.s32.totalorder %s1454_s5, %s1030_s26 }
  0x75   : > { %335 = vmatpush1.bf16.msra.mxu0 %v318_v22  ;;  %v490_v38 = vld [vmem:[#allocation7 + $0x68] sm:$0xff]  ;;  %v513_v39 = vpack.c.bf16 %v487_v34, %v485_v33  ;;  %v323_v40 = vpack.c.bf16 %v299_v37, %v297_v36  ;;  %v492_v41 = vld [vmem:[#allocation7 + $0x78] sm:$0xff]  ;;  %v296_v42 = vld [vmem:[#allocation5 + $0x60] sm:$0xff]  ;;  %p1028_p3 = pneg %p1027_p1 }
  0x76   : > { %528 = vmatpush1.bf16.msra.mxu1 %v511_v26  ;;  %336 = vmatprep.subr.bf16.mxu0 %v321_v27  ;;  %v298_v43 = vld [vmem:[#allocation5 + $0x70] sm:$0xff]  ;;  %v516_v44 = vpack.c.bf16 %v492_v41, %v490_v38  ;;  %v489_v45 = vld [vmem:[#allocation7 + $0x60] sm:$0xff]  ;;  %v301_v47 = vld [vmem:[#allocation5 + $0x88] sm:$0xff] }
  0x77   : > { %529 = vmatprep.subr.bf16.mxu1 %v514_v31  ;;  %v491_v46 = vld [vmem:[#allocation7 + $0x70] sm:$0xff]  ;;  %v303_v48 = vld [vmem:[#allocation5 + $0x98] sm:$0xff]  ;;  %v494_v49 = vld [vmem:[#allocation7 + $0x88] sm:$0xff]  ;;  %v322_v51 = vpack.c.bf16 %v298_v43, %v296_v42 }
  0x78   : > { %v496_v50 = vld [vmem:[#allocation7 + $0x98] sm:$0xff]  ;;  %v515_v52 = vpack.c.bf16 %v491_v46, %v489_v45  ;;  %v325_v53 = vpack.c.bf16 %v303_v48, %v301_v47  ;;  %v300_v54 = vld [vmem:[#allocation5 + $0x80] sm:$0xff]  ;;  %v302_v55 = vld [vmem:[#allocation5 + $0x90] sm:$0xff] }
  0x79   : > { %337 = vmatpush1.bf16.msra.mxu0 %v320_v35  ;;  %v493_v56 = vld [vmem:[#allocation7 + $0x80] sm:$0xff]  ;;  %v518_v57 = vpack.c.bf16 %v496_v50, %v494_v49  ;;  %v495_v58 = vld [vmem:[#allocation7 + $0x90] sm:$0xff]  ;;  %v305_v59 = vld [vmem:[#allocation5 + $0xa8] sm:$0xff]  ;;  %v324_v63 = vpack.c.bf16 %v302_v55, %v300_v54 }
  0x7a   : > { %530 = vmatpush1.bf16.msra.mxu1 %v513_v39  ;;  %338 = vmatprep.subr.bf16.mxu0 %v323_v40  ;;  %v307_v60 = vld [vmem:[#allocation5 + $0xb8] sm:$0xff]  ;;  %v498_v61 = vld [vmem:[#allocation7 + $0xa8] sm:$0xff]  ;;  %v517_v1 = vpack.c.bf16 %v495_v58, %v493_v56  ;;  %v304_v3 = vld [vmem:[#allocation5 + $0xa0] sm:$0xff] }
  0x7b   : > { %531 = vmatprep.subr.bf16.mxu1 %v516_v44  ;;  %v500_v62 = vld [vmem:[#allocation7 + $0xb8] sm:$0xff]  ;;  %v327_v2 = vpack.c.bf16 %v307_v60, %v305_v59  ;;  %v306_v4 = vld [vmem:[#allocation5 + $0xb0] sm:$0xff]  ;;  %v497_v5 = vld [vmem:[#allocation7 + $0xa0] sm:$0xff] }
  0x7c   : > { %v520_v6 = vpack.c.bf16 %v500_v62, %v498_v61  ;;  %v499_v7 = vld [vmem:[#allocation7 + $0xb0] sm:$0xff]  ;;  %v309_v8 = vld [vmem:[#allocation5 + $0xc8] sm:$0xff]  ;;  %v311_v9 = vld [vmem:[#allocation5 + $0xd8] sm:$0xff]  ;;  %v326_v12 = vpack.c.bf16 %v306_v4, %v304_v3 }
  0x7d   : > { %339 = vmatpush1.bf16.msra.mxu0 %v322_v51  ;;  %v502_v10 = vld [vmem:[#allocation7 + $0xc8] sm:$0xff]  ;;  %v504_v11 = vld [vmem:[#allocation7 + $0xd8] sm:$0xff]  ;;  %v519_v13 = vpack.c.bf16 %v499_v7, %v497_v5  ;;  %v329_v14 = vpack.c.bf16 %v311_v9, %v309_v8  ;;  %v308_v15 = vld [vmem:[#allocation5 + $0xc0] sm:$0xff] }
  0x7e   : > { %532 = vmatpush1.bf16.msra.mxu1 %v515_v52  ;;  %340 = vmatprep.subr.bf16.mxu0 %v325_v53  ;;  %v310_v16 = vld [vmem:[#allocation5 + $0xd0] sm:$0xff]  ;;  %v501_v17 = vld [vmem:[#allocation7 + $0xc0] sm:$0xff]  ;;  %v522_v18 = vpack.c.bf16 %v504_v11, %v502_v10  ;;  %v313_v20 = vld [vmem:[#allocation5 + $0xe8] sm:$0xff] }
  0x7f   : > { %533 = vmatprep.subr.bf16.mxu1 %v518_v57  ;;  %v503_v19 = vld [vmem:[#allocation7 + $0xd0] sm:$0xff]  ;;  %v315_v21 = vld [vmem:[#allocation5 + $0xf8] sm:$0xff]  ;;  %v506_v22 = vld [vmem:[#allocation7 + $0xe8] sm:$0xff]  ;;  %v328_v24 = vpack.c.bf16 %v310_v16, %v308_v15 }
  0x80   : > { %v508_v23 = vld [vmem:[#allocation7 + $0xf8] sm:$0xff]  ;;  %v521_v25 = vpack.c.bf16 %v503_v19, %v501_v17  ;;  %v331_v26 = vpack.c.bf16 %v315_v21, %v313_v20  ;;  %v312_v27 = vld [vmem:[#allocation5 + $0xe0] sm:$0xff]  ;;  %v314_v28 = vld [vmem:[#allocation5 + $0xf0] sm:$0xff] }
  0x81   : > { %341 = vmatpush1.bf16.msra.mxu0 %v324_v63  ;;  %v524_v29 = vpack.c.bf16 %v508_v23, %v506_v22  ;;  %v505_v30 = vld [vmem:[#allocation7 + $0xe0] sm:$0xff]  ;;  %v507_v31 = vld [vmem:[#allocation7 + $0xf0] sm:$0xff]  ;;  %v330_v32 = vpack.c.bf16 %v314_v28, %v312_v27  ;;  %v261_v34 = vld [vmem:[%s1342_s10 + $0x8] sm:$0xff] }
  0x82   : > { %534 = vmatpush1.bf16.msra.mxu1 %v517_v1  ;;  %342 = vmatprep.subr.bf16.mxu0 %v327_v2  ;;  %v260_v33 = vld [vmem:[%s1342_s10] sm:$0xff]  ;;  %v523_v35 = vpack.c.bf16 %v507_v31, %v505_v30  ;;  %v262_v37 = vld [vmem:[%s1342_s10 + $0x10] sm:$0xff]  ;;  %v263_v38 = vld [vmem:[%s1342_s10 + $0x18] sm:$0xff] }
  0x83   : > { %535 = vmatprep.subr.bf16.mxu1 %v520_v6  ;;  %v276_v36 = vpack.c.bf16 %v261_v34, %v260_v33  ;;  %v277_v39 = vpack.c.bf16 %v263_v38, %v262_v37  ;;  %v264_v40 = vld [vmem:[%s1342_s10 + $0x20] sm:$0xff]  ;;  %v265_v41 = vld [vmem:[%s1342_s10 + $0x28] sm:$0xff]  ;;  %v266_v43 = vld [vmem:[%s1342_s10 + $0x30] sm:$0xff] }
  0x84   : > { %v278_v42 = vpack.c.bf16 %v265_v41, %v264_v40  ;;  %v267_v44 = vld [vmem:[%s1342_s10 + $0x38] sm:$0xff]  ;;  %v268_v46 = vld [vmem:[%s1342_s10 + $0x40] sm:$0xff]  ;;  %v269_v47 = vld [vmem:[%s1342_s10 + $0x48] sm:$0xff] }
  0x85   : > { %343 = vmatpush1.bf16.msra.mxu0 %v326_v12  ;;  %v279_v45 = vpack.c.bf16 %v267_v44, %v266_v43  ;;  %v280_v48 = vpack.c.bf16 %v269_v47, %v268_v46  ;;  %v270_v49 = vld [vmem:[%s1342_s10 + $0x50] sm:$0xff]  ;;  %v271_v50 = vld [vmem:[%s1342_s10 + $0x58] sm:$0xff]  ;;  %v272_v52 = vld [vmem:[%s1342_s10 + $0x60] sm:$0xff] }
  0x86   : > { %536 = vmatpush1.bf16.msra.mxu1 %v519_v13  ;;  %344 = vmatprep.subr.bf16.mxu0 %v329_v14  ;;  %v281_v51 = vpack.c.bf16 %v271_v50, %v270_v49  ;;  %v273_v53 = vld [vmem:[%s1342_s10 + $0x68] sm:$0xff]  ;;  %v274_v55 = vld [vmem:[%s1342_s10 + $0x70] sm:$0xff]  ;;  %v275_v56 = vld [vmem:[%s1342_s10 + $0x78] sm:$0xff]  ;;  %s1031_s10 = scalar_lea.vmem %s1030_s26, 8192 }
  0x87   : > { %537 = vmatprep.subr.bf16.mxu1 %v522_v18  ;;  %v282_v54 = vpack.c.bf16 %v273_v53, %v272_v52  ;;  %v283_v57 = vpack.c.bf16 %v275_v56, %v274_v55  ;;  %p1033_p9 = scmp.lt.s32.totalorder %s1031_s10, %s1025_s25 }
  0x89   : > { %345 = vmatpush1.bf16.msra.mxu0 %v328_v24  ;;  %p1034_p12 = por %p1033_p9, %p1032_p7 }
  0x8a   : > { %538 = vmatpush1.bf16.msra.mxu1 %v521_v25  ;;  %346 = vmatprep.subr.bf16.mxu0 %v331_v26 }
  0x8b   : > { %539 = vmatprep.subr.bf16.mxu1 %v524_v29  ;;  %p1035_p2 = pnand %p1034_p12, %p1028_p3 }
  0x8d   : > { %347 = vmatpush1.bf16.msra.mxu0 %v330_v32 }
  0x8e   : > { %540 = vmatpush1.bf16.msra.mxu1 %v523_v35 }
  0x90   : > { %365 = vmatmul.mubr.bf16.vlgmr.msra.gmra.mrb[0].mxu0 %v276_v36 }
  0x91   : > { %558 = vmatmul.mubr.bf16.vlgmr.msra.gmra.mrb[0].mxu1 %v276_v36  ;;  %374 = vmatprep.mubr.bf16.mxu0 %v1136_v0 }
  0x92   : > { %567 = vmatprep.mubr.bf16.mxu1 %v1136_v0 }
  0x98   : > { %375 = vmatmul.mubr.bf16.gmra.mrb[4].mxu0 %v277_v39 }
  0x99   : > { %568 = vmatmul.mubr.bf16.gmra.mrb[4].mxu1 %v277_v39  ;;  %384 = vmatprep.mubr.bf16.mxu0 %v1136_v0 }
  0x9a   : > { %577 = vmatprep.mubr.bf16.mxu1 %v1136_v0 }
  0xa0   : > { %385 = vmatmul.mubr.bf16.gmra.mrb[8].mxu0 %v278_v42 }
  0xa1   : > { %578 = vmatmul.mubr.bf16.gmra.mrb[8].mxu1 %v278_v42  ;;  %394 = vmatprep.mubr.bf16.mxu0 %v1136_v0 }
  0xa2   : > { %587 = vmatprep.mubr.bf16.mxu1 %v1136_v0 }
  0xa8   : > { %395 = vmatmul.mubr.bf16.gmra.mrb[12].mxu0 %v279_v45 }
  0xa9   : > { %588 = vmatmul.mubr.bf16.gmra.mrb[12].mxu1 %v279_v45  ;;  %404 = vmatprep.mubr.bf16.mxu0 %v1136_v0 }
  0xaa   : > { %597 = vmatprep.mubr.bf16.mxu1 %v1136_v0 }
  0xb0   : > { %405 = vmatmul.mubr.bf16.gmra.mrb[16].mxu0 %v280_v48 }
  0xb1   : > { %598 = vmatmul.mubr.bf16.gmra.mrb[16].mxu1 %v280_v48  ;;  %414 = vmatprep.mubr.bf16.mxu0 %v1136_v0 }
  0xb2   : > { %607 = vmatprep.mubr.bf16.mxu1 %v1136_v0 }
  0xb8   : > { %415 = vmatmul.mubr.bf16.gmra.mrb[20].mxu0 %v281_v51 }
  0xb9   : > { %608 = vmatmul.mubr.bf16.gmra.mrb[20].mxu1 %v281_v51  ;;  %424 = vmatprep.mubr.bf16.mxu0 %v1136_v0 }
  0xba   : > { %617 = vmatprep.mubr.bf16.mxu1 %v1136_v0 }
  0xc0   : > { %425 = vmatmul.mubr.bf16.gmra.mrb[24].mxu0 %v282_v54 }
  0xc1   : > { %618 = vmatmul.mubr.bf16.gmra.mrb[24].mxu1 %v282_v54  ;;  %434 = vmatprep.mubr.bf16.mxu0 %v1136_v0 }
  0xc2   : > { %627 = vmatprep.mubr.bf16.mxu1 %v1136_v0 }
  0xc8   : > { %435 = vmatmul.mubr.bf16.gmra.mrb[28].mxu0 %v283_v57 }
  0xc9   : > { %628 = vmatmul.mubr.bf16.gmra.mrb[28].mxu1 %v283_v57 }
 0x163   : > { %v366_v58 = vpop.f32.mrb[0].mxu0 }
 0x164   : > { %445 = vst [vmem:[%s1385_s23] sm:$0xff] %v366_v58  ;;  %v559_v59 = vpop.f32.mrb[0].mxu1  ;;  %v368_v60 = vpop.f32.mrb[1].mxu0 }
 0x165   : > { %638 = vst [vmem:[%s1388_s27] sm:$0xff] %v559_v59  ;;  %446 = vst [vmem:[%s1385_s23 + $0x8] sm:$0xff] %v368_v60  ;;  %v561_v0 = vpop.f32.mrb[1].mxu1  ;;  %v370_v61 = vpop.f32.mrb[2].mxu0 }
 0x166   : > { %639 = vst [vmem:[%s1388_s27 + $0x8] sm:$0xff] %v561_v0  ;;  %447 = vst [vmem:[%s1385_s23 + $0x10] sm:$0xff] %v370_v61  ;;  %v563_v62 = vpop.f32.mrb[2].mxu1  ;;  %v372_v63 = vpop.f32.mrb[3].mxu0 }
 0x167   : > { %640 = vst [vmem:[%s1388_s27 + $0x10] sm:$0xff] %v563_v62  ;;  %448 = vst [vmem:[%s1385_s23 + $0x18] sm:$0xff] %v372_v63  ;;  %v565_v1 = vpop.f32.mrb[3].mxu1 }
 0x168   : > { %641 = vst [vmem:[%s1388_s27 + $0x18] sm:$0xff] %v565_v1 }
 0x16b   : > { %v376_v2 = vpop.f32.mrb[4].mxu0 }
 0x16c   : > { %449 = vst [vmem:[%s1385_s23 + $0x20] sm:$0xff] %v376_v2  ;;  %v569_v3 = vpop.f32.mrb[4].mxu1  ;;  %v378_v4 = vpop.f32.mrb[5].mxu0 }
 0x16d   : > { %642 = vst [vmem:[%s1388_s27 + $0x20] sm:$0xff] %v569_v3  ;;  %450 = vst [vmem:[%s1385_s23 + $0x28] sm:$0xff] %v378_v4  ;;  %v571_v5 = vpop.f32.mrb[5].mxu1  ;;  %v380_v6 = vpop.f32.mrb[6].mxu0 }
 0x16e   : > { %643 = vst [vmem:[%s1388_s27 + $0x28] sm:$0xff] %v571_v5  ;;  %451 = vst [vmem:[%s1385_s23 + $0x30] sm:$0xff] %v380_v6  ;;  %v573_v7 = vpop.f32.mrb[6].mxu1  ;;  %v382_v8 = vpop.f32.mrb[7].mxu0 }
 0x16f   : > { %644 = vst [vmem:[%s1388_s27 + $0x30] sm:$0xff] %v573_v7  ;;  %452 = vst [vmem:[%s1385_s23 + $0x38] sm:$0xff] %v382_v8  ;;  %v575_v9 = vpop.f32.mrb[7].mxu1 }
 0x170   : > { %645 = vst [vmem:[%s1388_s27 + $0x38] sm:$0xff] %v575_v9 }
 0x173   : > { %v386_v10 = vpop.f32.mrb[8].mxu0 }
 0x174   : > { %453 = vst [vmem:[%s1385_s23 + $0x40] sm:$0xff] %v386_v10  ;;  %v579_v11 = vpop.f32.mrb[8].mxu1  ;;  %v388_v12 = vpop.f32.mrb[9].mxu0 }
 0x175   : > { %646 = vst [vmem:[%s1388_s27 + $0x40] sm:$0xff] %v579_v11  ;;  %454 = vst [vmem:[%s1385_s23 + $0x48] sm:$0xff] %v388_v12  ;;  %v581_v13 = vpop.f32.mrb[9].mxu1  ;;  %v390_v14 = vpop.f32.mrb[10].mxu0 }
 0x176   : > { %647 = vst [vmem:[%s1388_s27 + $0x48] sm:$0xff] %v581_v13  ;;  %455 = vst [vmem:[%s1385_s23 + $0x50] sm:$0xff] %v390_v14  ;;  %v583_v15 = vpop.f32.mrb[10].mxu1  ;;  %v392_v16 = vpop.f32.mrb[11].mxu0 }
 0x177   : > { %648 = vst [vmem:[%s1388_s27 + $0x50] sm:$0xff] %v583_v15  ;;  %456 = vst [vmem:[%s1385_s23 + $0x58] sm:$0xff] %v392_v16  ;;  %v585_v17 = vpop.f32.mrb[11].mxu1 }
 0x178   : > { %649 = vst [vmem:[%s1388_s27 + $0x58] sm:$0xff] %v585_v17 }
 0x17b   : > { %v396_v18 = vpop.f32.mrb[12].mxu0 }
 0x17c   : > { %457 = vst [vmem:[%s1385_s23 + $0x60] sm:$0xff] %v396_v18  ;;  %v589_v19 = vpop.f32.mrb[12].mxu1  ;;  %v398_v20 = vpop.f32.mrb[13].mxu0 }
 0x17d   : > { %650 = vst [vmem:[%s1388_s27 + $0x60] sm:$0xff] %v589_v19  ;;  %458 = vst [vmem:[%s1385_s23 + $0x68] sm:$0xff] %v398_v20  ;;  %v591_v21 = vpop.f32.mrb[13].mxu1  ;;  %v400_v22 = vpop.f32.mrb[14].mxu0 }
 0x17e   : > { %651 = vst [vmem:[%s1388_s27 + $0x68] sm:$0xff] %v591_v21  ;;  %459 = vst [vmem:[%s1385_s23 + $0x70] sm:$0xff] %v400_v22  ;;  %v593_v23 = vpop.f32.mrb[14].mxu1  ;;  %v402_v24 = vpop.f32.mrb[15].mxu0 }
 0x17f   : > { %652 = vst [vmem:[%s1388_s27 + $0x70] sm:$0xff] %v593_v23  ;;  %460 = vst [vmem:[%s1385_s23 + $0x78] sm:$0xff] %v402_v24  ;;  %v595_v25 = vpop.f32.mrb[15].mxu1 }
 0x180   : > { %653 = vst [vmem:[%s1388_s27 + $0x78] sm:$0xff] %v595_v25 }
 0x183   : > { %v406_v26 = vpop.f32.mrb[16].mxu0 }
 0x184   : > { %461 = vst [vmem:[%s1385_s23 + $0x80] sm:$0xff] %v406_v26  ;;  %v599_v27 = vpop.f32.mrb[16].mxu1  ;;  %v408_v28 = vpop.f32.mrb[17].mxu0 }
 0x185   : > { %654 = vst [vmem:[%s1388_s27 + $0x80] sm:$0xff] %v599_v27  ;;  %462 = vst [vmem:[%s1385_s23 + $0x88] sm:$0xff] %v408_v28  ;;  %v601_v29 = vpop.f32.mrb[17].mxu1  ;;  %v410_v30 = vpop.f32.mrb[18].mxu0 }
 0x186   : > { %655 = vst [vmem:[%s1388_s27 + $0x88] sm:$0xff] %v601_v29  ;;  %463 = vst [vmem:[%s1385_s23 + $0x90] sm:$0xff] %v410_v30  ;;  %v603_v31 = vpop.f32.mrb[18].mxu1  ;;  %v412_v32 = vpop.f32.mrb[19].mxu0 }
 0x187   : > { %656 = vst [vmem:[%s1388_s27 + $0x90] sm:$0xff] %v603_v31  ;;  %464 = vst [vmem:[%s1385_s23 + $0x98] sm:$0xff] %v412_v32  ;;  %v605_v33 = vpop.f32.mrb[19].mxu1 }
 0x188   : > { %657 = vst [vmem:[%s1388_s27 + $0x98] sm:$0xff] %v605_v33 }
 0x18b   : > { %v416_v34 = vpop.f32.mrb[20].mxu0 }
 0x18c   : > { %465 = vst [vmem:[%s1385_s23 + $0xa0] sm:$0xff] %v416_v34  ;;  %v609_v35 = vpop.f32.mrb[20].mxu1  ;;  %v418_v36 = vpop.f32.mrb[21].mxu0 }
 0x18d   : > { %658 = vst [vmem:[%s1388_s27 + $0xa0] sm:$0xff] %v609_v35  ;;  %466 = vst [vmem:[%s1385_s23 + $0xa8] sm:$0xff] %v418_v36  ;;  %v611_v37 = vpop.f32.mrb[21].mxu1  ;;  %v420_v38 = vpop.f32.mrb[22].mxu0 }
 0x18e   : > { %659 = vst [vmem:[%s1388_s27 + $0xa8] sm:$0xff] %v611_v37  ;;  %467 = vst [vmem:[%s1385_s23 + $0xb0] sm:$0xff] %v420_v38  ;;  %v613_v39 = vpop.f32.mrb[22].mxu1  ;;  %v422_v40 = vpop.f32.mrb[23].mxu0 }
 0x18f   : > { %660 = vst [vmem:[%s1388_s27 + $0xb0] sm:$0xff] %v613_v39  ;;  %468 = vst [vmem:[%s1385_s23 + $0xb8] sm:$0xff] %v422_v40  ;;  %v615_v41 = vpop.f32.mrb[23].mxu1 }
 0x190   : > { %661 = vst [vmem:[%s1388_s27 + $0xb8] sm:$0xff] %v615_v41 }
 0x193   : > { %v426_v42 = vpop.f32.mrb[24].mxu0 }
 0x194   : > { %469 = vst [vmem:[%s1385_s23 + $0xc0] sm:$0xff] %v426_v42  ;;  %v619_v43 = vpop.f32.mrb[24].mxu1  ;;  %v428_v44 = vpop.f32.mrb[25].mxu0 }
 0x195   : > { %662 = vst [vmem:[%s1388_s27 + $0xc0] sm:$0xff] %v619_v43  ;;  %470 = vst [vmem:[%s1385_s23 + $0xc8] sm:$0xff] %v428_v44  ;;  %v621_v45 = vpop.f32.mrb[25].mxu1  ;;  %v430_v46 = vpop.f32.mrb[26].mxu0 }
 0x196   : > { %663 = vst [vmem:[%s1388_s27 + $0xc8] sm:$0xff] %v621_v45  ;;  %471 = vst [vmem:[%s1385_s23 + $0xd0] sm:$0xff] %v430_v46  ;;  %v623_v47 = vpop.f32.mrb[26].mxu1  ;;  %v432_v48 = vpop.f32.mrb[27].mxu0 }
 0x197   : > { %664 = vst [vmem:[%s1388_s27 + $0xd0] sm:$0xff] %v623_v47  ;;  %472 = vst [vmem:[%s1385_s23 + $0xd8] sm:$0xff] %v432_v48  ;;  %v625_v49 = vpop.f32.mrb[27].mxu1 }
 0x198   : > { %665 = vst [vmem:[%s1388_s27 + $0xd8] sm:$0xff] %v625_v49 }
 0x19b   : > { %v436_v50 = vpop.f32.mrb[28].mxu0 }
 0x19c   : > { %473 = vst [vmem:[%s1385_s23 + $0xe0] sm:$0xff] %v436_v50  ;;  %v629_v51 = vpop.f32.mrb[28].mxu1  ;;  %v438_v52 = vpop.f32.mrb[29].mxu0 }
 0x19d   : > { %666 = vst [vmem:[%s1388_s27 + $0xe0] sm:$0xff] %v629_v51  ;;  %474 = vst [vmem:[%s1385_s23 + $0xe8] sm:$0xff] %v438_v52  ;;  %v631_v53 = vpop.f32.mrb[29].mxu1  ;;  %v440_v54 = vpop.f32.mrb[30].mxu0 }
 0x19e   : > { %667 = vst [vmem:[%s1388_s27 + $0xe8] sm:$0xff] %v631_v53  ;;  %475 = vst [vmem:[%s1385_s23 + $0xf0] sm:$0xff] %v440_v54  ;;  %v633_v55 = vpop.f32.mrb[30].mxu1  ;;  %v442_v56 = vpop.f32.mrb[31].mxu0 }
 0x19f   : > { %668 = vst [vmem:[%s1388_s27 + $0xf0] sm:$0xff] %v633_v55  ;;  %476 = vst [vmem:[%s1385_s23 + $0xf8] sm:$0xff] %v442_v56  ;;  %v635_v57 = vpop.f32.mrb[31].mxu1 }
 0x1a0   : > { %669 = vst [vmem:[%s1388_s27 + $0xf8] sm:$0xff] %v635_v57 }
 0x1a1   : > { %1038 = shalt.err (!%p1035_p2)
}
 0x1a2   : > { %s1039_s21 = scalar_lea.hbm %s1450_s20, 4096  ;;  %s1043_s30 = scalar_lea.hbm %s1545_s3, 8192 }
 0x1a3   : > { %p1040_p13 = scmp.ne.s32.totalorder %s1450_s20, %s1039_s21  ;;  %p1044_p4 = scmp.lt.u32.totalorder %s1450_s20, %s1545_s3 }
 0x1a4   : > { %p1045_p5 = scmp.lt.u32.totalorder %s1043_s30, %s1039_s21  ;;  %p1047_p11 = scmp.lt.u32.totalorder %s1039_s21, %s1450_s20 }
 0x1a5   : > { %p1041_p6 = pnand %p1040_p13, %p1560_p0 }
 0x1a6   : > { %p1046_p8 = por %p1045_p5, %p1044_p4 }
 0x1a7   : > { %p1042_p10 = pneg %p1041_p6 }
 0x1a8   : > { %p1048_p1 = por %p1047_p11, %p1046_p8 }
 0x1aa   : > { %p1049_p3 = pnand %p1048_p1, %p1042_p10 }
 0x1ac   : > { %1052 = shalt.err (!%p1049_p3)
}
 0x1ad   : > { %s1138_s19 = smov 256   ;;  %s1139_s11 = smov 16  }
 0x1ae   : > { %870 = dma.vmem_to_hbm [thread:$0]  (%p1560_p0), %s1454_s5, 4096, %s1450_s20, %s671_s29, %s1138_s19, %s1138_s19, %s1139_s11  }
 0x1af   : > { %s676_s25 = scalar_lea.sflag [#allocation10], %s1338_s7  ;;  %s1053_s8 = scalar_lea.vmem %s1465_s28, 4096 }
 0x1b0   : > { %p1054_p7 = scmp.ne.s32.totalorder %s1465_s28, %s1053_s8  ;;  %s1140_s26 = smov [#allocation9]  }
 0x1b1   : > { %s1057_s10 = sshll.u32 %s1140_s26, 4  ;;  %s1058_s10 = int_to_ptr.vmem [resolvable:$false] %s1057_s10 }
 0x1b2   : > { %p1055_p9 = pnand %p1054_p7, %p1560_p0  ;;  %s1059_s21 = scalar_lea.vmem %s1058_s10, 8192 }
 0x1b3   : > { %p1060_p2 = scmp.lt.s32.totalorder %s1465_s28, %s1058_s10  ;;  %p1061_p13 = scmp.lt.s32.totalorder %s1059_s21, %s1053_s8 }
 0x1b4   : > { %p1056_p12 = pneg %p1055_p9 }
 0x1b5   : > { %p1062_p6 = por %p1061_p13, %p1060_p2 }
 0x1b7   : > { %p1063_p10 = pnand %p1062_p6, %p1056_p12 }
 0x1b9   : > { %1066 = shalt.err (!%p1063_p10)
}
 0x1ba   : > { %s1067_s5 = scalar_lea.hbm %s1463_s12, 4096  ;;  %s1071_s23 = scalar_lea.hbm %s1546_s4, 8192 }
 0x1bb   : > { %p1068_p4 = scmp.ne.s32.totalorder %s1463_s12, %s1067_s5  ;;  %p1072_p11 = scmp.lt.u32.totalorder %s1463_s12, %s1546_s4 }
 0x1bc   : > { %p1073_p1 = scmp.lt.u32.totalorder %s1071_s23, %s1067_s5  ;;  %p1075_p7 = scmp.lt.u32.totalorder %s1067_s5, %s1463_s12 }
 0x1bd   : > { %p1069_p5 = pnand %p1068_p4, %p1560_p0 }
 0x1be   : > { %p1074_p3 = por %p1073_p1, %p1072_p11 }
 0x1bf   : > { %p1070_p8 = pneg %p1069_p5 }
 0x1c0   : > { %p1076_p9 = por %p1075_p7, %p1074_p3 }
 0x1c2   : > { %p1077_p12 = pnand %p1076_p9, %p1070_p8 }
 0x1c4   : > { %1080 = shalt.err (!%p1077_p12)
}
 0x1c5   : > { %871 = dma.vmem_to_hbm [thread:$0]  (%p1560_p0), %s1465_s28, 4096, %s1463_s12, %s676_s25, %s1138_s19, %s1138_s19, %s1139_s11  }
 0x1c6 PF: > { %s722_s6 = sand.u32 1, %s1115_s15   ;;  %p1561_p2 = scmp.ne.s32.totalorder %s1551_s22, 0 }
 0x1c7   : > { %p1562_p13 = scmp.ge.s32.totalorder %s1127_s18, 2  ;;  %s723_s24 = scalar_lea.sflag [#allocation4], %s722_s6 }
 0x1c9   : > { %p886_p6 = pnand %p1562_p13, %p1561_p2 }
 0x1cb   : > { %1106 = dma.done.wait (!%p886_p6), %s723_s24, 4096  }
 0x1cc   : > { %1108 = vsyncadd (!%p886_p6), %s723_s24, 4294963200  ;;  %s732_s13 = scalar_lea.sflag [#allocation10], %s722_s6 }
 0x1cd   : > { %1110 = dma.done.wait (!%p886_p6), %s732_s13, 4096  }
 0x1ce   : > { %1112 = vsyncadd (!%p886_p6), %s732_s13, 4294963200  ;;  %p22_p0 = scmp.ge.s32.totalorder %s1276_s9, 4   ;;  %s1563_s15 = smov %s1119_s16 }
 0x1cf   : > { %s1564_s16 = smov %s1123_s17  ;;  %s1565_s17 = smov %s1292_s14 }
 0x1d0   : > { %s1566_s18 = smov %s1276_s9  ;;  %24 = sbr.rel (!%p22_p0) target bundleno = 8 (0x8), region = 102 }
 0x1d7   :  { %737 = vsyncpa [#allocation3], 1 }
 0x1d8   :  { %739 = vsyncpa [#allocation3 + $0x1], 1 }
 0x1d9   :  { %740 = vsyncpa [#allocation6], 1 }
 0x1da   :  { %741 = vsyncpa [#allocation4], 1 }
 0x1db   :  { %743 = vsyncpa [#allocation4 + $0x1], 1 }
 0x1dc   :  { %744 = vsyncpa [#allocation10], 1 }
 0x1dd   :  { %746 = vsyncpa [#allocation10 + $0x1], 1 }

</bundles_post_ra>
